<compile_context>
chip_gen: v7x
topology: tpu7x:2x2x1
jax: 0.10.0
libtpu: 0.0.40
codegen_flags: <defaults>
</compile_context>

<pallas_src>
import jax
import jax.numpy as jnp
from jax.experimental import pallas as pl
from jax.experimental.pallas import tpu as pltpu


def rezero_kernel(g_ref, x_ref, w_ref, o_ref, acc_ref):
    # g_ref:   SMEM scalar, shape (1,)
    # x_ref:   (tm, tk) VMEM tile of the flattened input
    # w_ref:   (tk, tn) VMEM tile of the weight
    # o_ref:   (tm, tn) VMEM tile of the output
    # acc_ref: (tm, tn) f32 VMEM accumulator, resident across the K axis
    k = pl.program_id(2)
    g = g_ref[0]

    @pl.when(k == 0)
    def _init():
        acc_ref[...] = jnp.zeros_like(acc_ref)

    # Rezero's g starts at 0.0: skip all MXU work when the result would be
    # multiplied by zero anyway (cheap scalar-slot branch; acc stays zero).
    @pl.when(g != 0.0)
    def _matmul():
        acc_ref[...] += jnp.dot(
            x_ref[...], w_ref[...], preferred_element_type=jnp.float32
        )

    @pl.when(k == pl.num_programs(2) - 1)
    def _finalize():
        o_ref[...] = (acc_ref[...] * g).astype(o_ref.dtype)


def rezero_apply(
    x,
    w,
    g,
    *,
    tile_m=512,
    tile_n=512,
    tile_k=512,
    compute_dtype=jnp.bfloat16,
):
    """Computes (x @ w) * g with a Pallas TPU kernel.

    x: (B, S, D)   input activations
    w: (D, D_out)  deterministic `fn` weights (dense projection)
    g: scalar / (1,) float32 Rezero parameter (init 0.0)
    """
    B, S, D = x.shape
    d_in, d_out = w.shape
    assert d_in == D
    M = B * S

    # Clamp tiles to the problem; small test shapes fall back to full extents
    # (which always satisfies the (8, 128) block constraint).
    tm = min(tile_m, M)
    tn = min(tile_n, d_out)
    tk = min(tile_k, D)
    assert M % tm == 0, f"M={M} not divisible by tile_m={tm}"
    assert d_out % tn == 0, f"D_out={d_out} not divisible by tile_n={tn}"
    assert D % tk == 0, f"D={D} not divisible by tile_k={tk}"

    out_dtype = x.dtype
    x2 = x.reshape(M, D).astype(compute_dtype)
    wc = w.astype(compute_dtype)
    g = jnp.asarray(g, jnp.float32).reshape((1,))

    grid = (M // tm, d_out // tn, D // tk)

    # Explicit VMEM budget: double-buffered x / w / out tiles + f32 accumulator.
    cdt_b = jnp.dtype(compute_dtype).itemsize
    out_b = jnp.dtype(out_dtype).itemsize
    working_set = (
        2 * tm * tk * cdt_b      # x tile, double-buffered
        + 2 * tk * tn * cdt_b    # w tile, double-buffered
        + 2 * tm * tn * out_b    # out tile, double-buffered
        + tm * tn * 4            # f32 accumulator
    )
    vmem_limit = int(min(max(2 * working_set, 16 * 1024 * 1024),
                         64 * 1024 * 1024))

    cost = pl.CostEstimate(
        flops=2 * M * D * d_out,
        transcendentals=0,
        bytes_accessed=(x2.size * cdt_b + wc.size * cdt_b + M * d_out * out_b),
    )

    out = pl.pallas_call(
        rezero_kernel,
        out_shape=jax.ShapeDtypeStruct((M, d_out), out_dtype),
        grid=grid,
        in_specs=[
            pl.BlockSpec(memory_space=pltpu.SMEM),               # g scalar
            pl.BlockSpec((tm, tk), lambda i, j, k: (i, k)),      # x rows
            pl.BlockSpec((tk, tn), lambda i, j, k: (k, j)),      # w slice
        ],
        out_specs=pl.BlockSpec((tm, tn), lambda i, j, k: (i, j)),
        scratch_shapes=[pltpu.VMEM((tm, tn), jnp.float32)],
        compiler_params=pltpu.CompilerParams(
            dimension_semantics=("parallel", "parallel", "arbitrary"),
            vmem_limit_bytes=vmem_limit,
        ),
        cost_estimate=cost,
    )(g, x2, wc)
    return out.reshape(B, S, d_out)


if __name__ == "__main__":
    key = jax.random.PRNGKey(0)
    kx, kw = jax.random.split(key)

    # Small shapes consistent with the module: (batch, seq, dim).
    B, S, D = 2, 8, 32
    x = jax.random.normal(kx, (B, S, D), dtype=jnp.float32)
    # Deterministic weights for `fn` (a dense projection dim -> dim).
    w = jax.random.normal(kw, (D, D), dtype=jnp.float32) / jnp.sqrt(D)

    # Module's actual init: g = 0  ->  output must be exactly zeros.
    g0 = jnp.array([0.0], dtype=jnp.float32)
    out0 = jax.block_until_ready(rezero_apply(x, w, g0))
    assert out0.shape == (B, S, D)
    assert jnp.all(out0 == 0.0), "g=0 output must be exactly zero"

    # Sanity-check the compute path with a nonzero scalar (bf16 MXU inputs,
    # f32 accumulation -> loosened tolerance vs. a pure-f32 reference).
    g1 = jnp.array([0.7], dtype=jnp.float32)
    out1 = jax.block_until_ready(rezero_apply(x, w, g1))
    ref1 = jnp.einsum("bsd,de->bse", x, w) * g1[0]
    assert jnp.allclose(out1, ref1, atol=5e-2, rtol=5e-2), "mismatch at g=0.7"

    print("KERNEL_OK")
</pallas_src>

<mosaic_0001>
module attributes {stable_mosaic.version = 11 : i64} {
  func.func @rezero_kernel(%arg0: i32, %arg1: i32, %arg2: i32, %arg3: memref<1xf32, #tpu.memory_space<smem>>, %arg4: memref<16x32xbf16, #tpu.memory_space<vmem>>, %arg5: memref<32x32xbf16, #tpu.memory_space<vmem>>, %arg6: memref<16x32xf32, #tpu.memory_space<vmem>>, %arg7: memref<16x32xf32, #tpu.memory_space<vmem>>) attributes {dimension_semantics = [#tpu.dimension_semantics<parallel>, #tpu.dimension_semantics<parallel>, #tpu.dimension_semantics<arbitrary>], iteration_bounds = array<i64: 1, 1, 1>, scalar_prefetch = 0 : i64, scratch_operands = 1 : i64, tpu.core_type = #tpu.core_type<tc>, window_params = [{transform_indices = @transform_0, window_bounds = array<i64: 1>}, {transform_indices = @transform_1, window_bounds = array<i64: 16, 32>}, {transform_indices = @transform_2, window_bounds = array<i64: 32, 32>}, {transform_indices = @transform_3, window_bounds = array<i64: 16, 32>}]} {
    %c0 = arith.constant 0 : index
    %0 = memref.load %arg3[%c0] : memref<1xf32, #tpu.memory_space<smem>>
    %c0_i32 = arith.constant 0 : i32
    %1 = arith.cmpi eq, %arg2, %c0_i32 : i32
    %2 = arith.extui %1 : i1 to i32
    %c0_i32_0 = arith.constant 0 : i32
    %3 = arith.cmpi ne, %2, %c0_i32_0 : i32
    scf.if %3 {
      %cst_4 = arith.constant 0.000000e+00 : f32
      %10 = vector.broadcast %cst_4 : f32 to vector<16x32xf32>
      %c0_5 = arith.constant 0 : index
      %c0_6 = arith.constant 0 : index
      %11 = vector.load %arg7[%c0_5, %c0_6] : memref<16x32xf32, #tpu.memory_space<vmem>>, vector<16x32xf32>
      tpu.vector_store %arg7[%c0_5, %c0_6], %10 {strides = array<i32>} : memref<16x32xf32, #tpu.memory_space<vmem>>, vector<16x32xf32>,
    } else {
    }
    %cst = arith.constant 0.000000e+00 : f32
    %4 = arith.cmpf one, %0, %cst : f32
    %5 = arith.extui %4 : i1 to i32
    %c0_i32_1 = arith.constant 0 : i32
    %6 = arith.cmpi ne, %5, %c0_i32_1 : i32
    scf.if %6 {
      %c0_4 = arith.constant 0 : index
      %c0_5 = arith.constant 0 : index
      %10 = vector.load %arg7[%c0_4, %c0_5] : memref<16x32xf32, #tpu.memory_space<vmem>>, vector<16x32xf32>
      %c0_6 = arith.constant 0 : index
      %c0_7 = arith.constant 0 : index
      %11 = vector.load %arg4[%c0_6, %c0_7] : memref<16x32xbf16, #tpu.memory_space<vmem>>, vector<16x32xbf16>
      %c0_8 = arith.constant 0 : index
      %c0_9 = arith.constant 0 : index
      %12 = vector.load %arg5[%c0_8, %c0_9] : memref<32x32xbf16, #tpu.memory_space<vmem>>, vector<32x32xbf16>
      %cst_10 = arith.constant dense<0.000000e+00> : vector<16x32xf32>
      %13 = tpu.matmul %11, %12, %cst_10 {dimension_numbers = #tpu.dot_dimension_numbers<[1], [0], [0], [1], [0, 0, 1, 1], [], []>} : vector<16x32xbf16>, vector<32x32xbf16>, vector<16x32xf32> -> vector<16x32xf32>
      %14 = arith.addf %10, %13 : vector<16x32xf32>
      %c0_11 = arith.constant 0 : index
      %c0_12 = arith.constant 0 : index
      %15 = vector.load %arg7[%c0_11, %c0_12] : memref<16x32xf32, #tpu.memory_space<vmem>>, vector<16x32xf32>
      tpu.vector_store %arg7[%c0_11, %c0_12], %14 {strides = array<i32>} : memref<16x32xf32, #tpu.memory_space<vmem>>, vector<16x32xf32>,
    } else {
    }
    %c0_i32_2 = arith.constant 0 : i32
    %7 = arith.cmpi eq, %arg2, %c0_i32_2 : i32
    %8 = arith.extui %7 : i1 to i32
    %c0_i32_3 = arith.constant 0 : i32
    %9 = arith.cmpi ne, %8, %c0_i32_3 : i32
    scf.if %9 {
      %c0_4 = arith.constant 0 : index
      %c0_5 = arith.constant 0 : index
      %10 = vector.load %arg7[%c0_4, %c0_5] : memref<16x32xf32, #tpu.memory_space<vmem>>, vector<16x32xf32>
      %11 = vector.broadcast %0 : f32 to vector<16x32xf32>
      %12 = arith.mulf %10, %11 : vector<16x32xf32>
      %c0_6 = arith.constant 0 : index
      %c0_7 = arith.constant 0 : index
      %13 = vector.load %arg6[%c0_6, %c0_7] : memref<16x32xf32, #tpu.memory_space<vmem>>, vector<16x32xf32>
      tpu.vector_store %arg6[%c0_6, %c0_7], %12 {strides = array<i32>} : memref<16x32xf32, #tpu.memory_space<vmem>>, vector<16x32xf32>,
    } else {
    }
    return
  }
  func.func @transform_0(%arg0: i32, %arg1: i32, %arg2: i32) -> i32 {
    %c0_i32 = arith.constant 0 : i32
    %c0_i32_0 = arith.constant 0 : i32
    return %c0_i32 : i32
  }
  func.func @transform_1(%arg0: i32, %arg1: i32, %arg2: i32) -> (i32, i32) {
    %c0_i32 = arith.constant 0 : i32
    return %arg0, %arg2 : i32, i32
  }
  func.func @transform_2(%arg0: i32, %arg1: i32, %arg2: i32) -> (i32, i32) {
    %c0_i32 = arith.constant 0 : i32
    return %arg2, %arg1 : i32, i32
  }
  func.func @transform_3(%arg0: i32, %arg1: i32, %arg2: i32) -> (i32, i32) {
    %c0_i32 = arith.constant 0 : i32
    return %arg0, %arg1 : i32, i32
  }
}

</mosaic_0001>

<bundles_post_ra>
// kernel: tpu_custom_call.1
= control target key start
LH: loop header
LB: loop body
LE: loop exit
PB: predicated region body
PF: predicated region fallthrough
CT: control target
= control target key end

     0   :  { %9 = vsyncpa [#allocation5], 0  ;;  %s339_s0 = inlined_call_operand.<no memory space> [shape: f32[1], index: 0, kind: input, shape index: {}]   ;;  %s340_s1 = inlined_call_operand.hbm [shape: bf16[16,32], index: 1, kind: input, shape index: {}]   ;;  %s341_s2 = inlined_call_operand.hbm [shape: bf16[32,32], index: 2, kind: input, shape index: {}]   ;;  %s342_s3 = inlined_call_operand.hbm [shape: f32[16,32], index: 3, kind: output, shape index: {}]  }
   0x1   :  { %10 = vsyncpa [#allocation8], 0 }
   0x2   :  { %11 = vsyncpa [#allocation6], 0  ;;  %s260_s12 = smov [#allocation4]   ;;  %s188_s16 = scalar_lea.hbm %s340_s1, 128 }
   0x3   :  { %s19_s13 = sshll.u32 %s260_s12, 4  ;;  %p189_p0 = scmp.ne.s32.totalorder %s340_s1, %s188_s16  ;;  %s20_s13 = int_to_ptr.vmem [resolvable:$true] %s19_s13 }
   0x4   :  { %p192_p1 = scmp.lt.u32.totalorder %s188_s16, %s340_s1 }
   0x6   :  { %p194_p2 = pnand %p192_p1, %p189_p0 }
   0x8   :  { %197 = shalt.err (!%p194_p2)
}
   0x9   :  { %s198_s21 = scalar_lea.vmem %s20_s13, 128  ;;  %p203_p4 = scmp.lt.s32.totalorder %s20_s13, %s20_s13 }
   0xa   :  { %p199_p3 = scmp.ne.s32.totalorder %s20_s13, %s198_s21  ;;  %p204_p5 = scmp.lt.s32.totalorder %s198_s21, %s198_s21 }
   0xc   :  { %p205_p6 = por %p204_p5, %p203_p4 }
   0xe   :  { %p206_p7 = pnand %p205_p6, %p199_p3 }
  0x10   :  { %209 = shalt.err (!%p206_p7)
}
  0x11   :  { %s261_s22 = smov 64   ;;  %s262_s23 = smov 4  }
  0x12   :  { %25 = dma.hbm_to_vmem [thread:$0]  %s340_s1, 128, %s20_s13, [#allocation5], %s261_s22, %s261_s22, %s262_s23  }
  0x13   :  { %s263_s26 = smov [#allocation7]   ;;  %s210_s30 = scalar_lea.hbm %s341_s2, 256 }
  0x14   :  { %s31_s27 = sshll.u32 %s263_s26, 4  ;;  %p211_p8 = scmp.ne.s32.totalorder %s341_s2, %s210_s30  ;;  %s32_s27 = int_to_ptr.vmem [resolvable:$true] %s31_s27 }
  0x15   :  { %p214_p9 = scmp.lt.u32.totalorder %s210_s30, %s341_s2 }
  0x17   :  { %p216_p10 = pnand %p214_p9, %p211_p8 }
  0x19   :  { %219 = shalt.err (!%p216_p10)
}
  0x1a   :  { %s220_s8 = scalar_lea.vmem %s32_s27, 256  ;;  %p225_p12 = scmp.lt.s32.totalorder %s32_s27, %s32_s27 }
  0x1b   :  { %p221_p11 = scmp.ne.s32.totalorder %s32_s27, %s220_s8  ;;  %p226_p13 = scmp.lt.s32.totalorder %s220_s8, %s220_s8 }
  0x1d   :  { %p227_p0 = por %p226_p13, %p225_p12 }
  0x1f   :  { %p228_p1 = pnand %p227_p0, %p221_p11 }
  0x21   :  { %231 = shalt.err (!%p228_p1)
}
  0x22   :  { %37 = dma.hbm_to_vmem [thread:$0]  %s341_s2, 256, %s32_s27, [#allocation8], %s261_s22, %s261_s22, %s262_s23  }
  0x23   :  { %254 = dma.done.wait [#allocation5], 128  }
  0x24   :  { %255 = vsyncadd [#allocation5], 4294967168 }
  0x25   :  { %256 = dma.done.wait [#allocation8], 256  }
  0x26   :  { %257 = vsyncadd [#allocation8], 4294967040  ;;  %vm50_vm0 = vcmask 261120   ;;  %p53_p2 = scmp.ne.f32.partialorder %s339_s0, 0.0  ;;  %v264_v0 = vmov 0.0  }
  0x27   :  { %51 = vst.msk [vmem:[#allocation2] sm:$0xff] %vm50_vm0, %v264_v0  ;;  %52 = vst.msk [vmem:[#allocation2 + $0x8] sm:$0xff] %vm50_vm0, %v264_v0  ;;  %v185_v1 = vld [vmem:[#allocation7] sm:$0xff] (%p53_p2)   ;;  %v265_v2 = vmov (%p53_p2), 0.0   ;;  %v186_v3 = vld [vmem:[#allocation7 + $0x8] sm:$0xff] (%p53_p2)   ;;  %vm266_vm1 = vmmov (%p53_p2), 0  }
  0x28   :  { %56 = sbr.rel (!%p53_p2) target bundleno = 265 (0x109), region = 29  ;;  %167 = vmatprep.subr.bf16.mxu0 (%p53_p2), %v265_v2  ;;  %171 = vmatprep.mubr.msk.bf16.mxu0 (%p53_p2), %vm266_vm1, %v265_v2  ;;  %v187_v4 = vld [vmem:[#allocation4] sm:$0xff] (%p53_p2)  }
  0x29   :  { %168 = vmatpush3.bf16.msra.mxu0 (%p53_p2), %v185_v1 }
  0x2a   :  { %169 = vmatprep.subr.bf16.mxu0 (%p53_p2), %v265_v2 }
  0x2d   :  { %170 = vmatpush3.bf16.msra.mxu0 (%p53_p2), %v186_v3 }
  0x2e   :  { %v57_v5 = vld [vmem:[#allocation2] sm:$0xff] (%p53_p2)  ;;  %v58_v7 = vld [vmem:[#allocation2 + $0x8] sm:$0xff] (%p53_p2) }
  0x30   :  { %172 = vmatmul.mubr.msk.bf16.vlgmr.msra.gmra.mrb[0].mxu0 %vm50_vm0, %v187_v4 }
 0x103   :  { %v120_v6 = vpop.f32.mrb[0].mxu0 }
 0x104   :  { %v127_v8 = vadd.f32 %v120_v6, %v57_v5  ;;  %v173_v9 = vpop.f32.mrb[1].mxu0 }
 0x105   :  { %v123_v10 = vpop.f32.mrb[2].mxu0 }
 0x106   :  { %129 = vst.msk [vmem:[#allocation2] sm:$0xff] %vm50_vm0, %v127_v8  ;;  %v128_v11 = vadd.f32 %v123_v10, %v58_v7  ;;  %v174_v12 = vpop.f32.mrb[3].mxu0 }
 0x108   :  { %130 = vst.msk [vmem:[#allocation2 + $0x8] sm:$0xff] %vm50_vm0, %v128_v11 }
 0x109 PF:  { %v136_v14 = vstv %s339_s0  ;;  %s267_s13 = smov [#allocation9]  }
 0x10a   :  { %s147_s14 = sshll.u32 %s267_s13, 4  ;;  %s148_s14 = int_to_ptr.vmem [resolvable:$true] %s147_s14 }
 0x10b   :  { %s232_s15 = scalar_lea.vmem %s148_s14, 256  ;;  %p237_p4 = scmp.lt.s32.totalorder %s148_s14, %s148_s14 }
 0x10c   :  { %p233_p3 = scmp.ne.s32.totalorder %s148_s14, %s232_s15  ;;  %p238_p5 = scmp.lt.s32.totalorder %s232_s15, %s232_s15 }
 0x10d   :  { %v134_v13 = vld [vmem:[#allocation2] sm:$0xff] }
 0x10e   :  { %v137_v16 = vmul.f32 %v136_v14, %v134_v13  ;;  %p239_p6 = por %p238_p5, %p237_p4 }
 0x10f   :  { %v135_v15 = vld [vmem:[#allocation2 + $0x8] sm:$0xff] }
 0x110   :  { %v138_v17 = vmul.f32 %v136_v14, %v135_v15  ;;  %140 = vst.msk [vmem:[#allocation9] sm:$0xff] %vm50_vm0, %v137_v16  ;;  %p240_p7 = pnand %p239_p6, %p233_p3 }
 0x112   :  { %141 = vst.msk [vmem:[#allocation9 + $0x8] sm:$0xff] %vm50_vm0, %v138_v17 }
 0x113   :  { %243 = shalt.err (!%p240_p7)
}
 0x114   :  { %s244_s0 = scalar_lea.hbm %s342_s3, 256 }
 0x115   :  { %p245_p8 = scmp.ne.s32.totalorder %s342_s3, %s244_s0  ;;  %p248_p9 = scmp.lt.u32.totalorder %s244_s0, %s342_s3 }
 0x117   :  { %p250_p10 = pnand %p248_p9, %p245_p8 }
 0x119   :  { %253 = shalt.err (!%p250_p10)
}
 0x11a   :  { %s268_s22 = smov 128   ;;  %s269_s23 = smov 8  }
 0x11b   :  { %153 = dma.vmem_to_hbm [thread:$0]  %s148_s14, 256, %s342_s3, [#allocation6], %s268_s22, %s268_s22, %s269_s23  }
 0x11c   :  { %258 = dma.done.wait [#allocation6], 256  }
 0x11d   :  { %259 = vsyncadd [#allocation6], 4294967040 }
 0x11e   :  { %157 = vsyncpa [#allocation5], 1 }
 0x11f   :  { %158 = vsyncpa [#allocation8], 1 }
 0x120   :  { %159 = vsyncpa [#allocation6], 1 }

</bundles_post_ra>
